<compile_context>
chip_gen: v6e
topology: v6e:2x2x1
jax: 0.10.0
libtpu: 0.0.40
codegen_flags: <defaults>
</compile_context>

<pallas_src>
import functools

import jax
import jax.numpy as jnp
from jax.experimental import pallas as pl
from jax.experimental.pallas import tpu as pltpu


def _round_up(n, m):
    return ((n + m - 1) // m) * m


def _fused_mlp_kernel(x_ref, *refs, n_hidden, eps):
    """Fused MLP: (Linear -> LayerNorm -> ReLU) x n_hidden -> Linear.

    refs layout: [w, b, gamma, beta] per hidden layer, then [w, b] for the
    final layer, then the output ref.  All tensors are at their TRUE widths;
    LayerNorm statistics are therefore exact by construction.
    """
    out_ref = refs[-1]
    p = refs[:-1]

    h = x_ref[...].astype(jnp.float32)
    idx = 0
    for _ in range(n_hidden):
        w = p[idx][...]
        b = p[idx + 1][...]
        g = p[idx + 2][...]
        bt = p[idx + 3][...]
        idx += 4

        # Linear (MXU, f32 accumulate).  Operands cast to the weight dtype
        # (f32 or bf16); accumulation stays f32.
        h = jnp.dot(h.astype(w.dtype), w, preferred_element_type=jnp.float32) + b

        # LayerNorm over the true width, two-pass variance (matches reference).
        mu = jnp.mean(h, axis=-1, keepdims=True)
        d = h - mu
        var = jnp.mean(d * d, axis=-1, keepdims=True)
        hn = d * jax.lax.rsqrt(var + eps)

        # Affine + ReLU (all f32 VALU math).
        h = jnp.maximum(hn * g + bt, 0.0)

    w = p[idx][...]
    b = p[idx + 1][...]
    out = jnp.dot(h.astype(w.dtype), w, preferred_element_type=jnp.float32) + b
    out_ref[...] = out.astype(out_ref.dtype)


def init_params(key, dims):
    """PyTorch-style init: Linear(U(-1/sqrt(fan_in))) + LayerNorm(ones/zeros)."""
    params = []
    n_layers = len(dims) - 1
    for i in range(n_layers):
        key, kw, kb = jax.random.split(key, 3)
        fan_in, fan_out = dims[i], dims[i + 1]
        bound = 1.0 / (fan_in ** 0.5)
        w = jax.random.uniform(kw, (fan_out, fan_in), jnp.float32, -bound, bound)
        b = jax.random.uniform(kb, (fan_out,), jnp.float32, -bound, bound)
        if i < n_layers - 1:
            gamma = jnp.ones((fan_out,), jnp.float32)
            beta = jnp.zeros((fan_out,), jnp.float32)
            params.append(("hidden", w, b, gamma, beta))
        else:
            params.append(("final", w, b))
    return params


def prepare_params(params, param_dtype=jnp.float32):
    """One-time (hoisted) transpose of all weights; no padding.

    param_dtype=jnp.bfloat16 halves VMEM-resident parameter / matmul-operand
    footprint (recommended on v6e/v7x); LN/ReLU math stays f32 regardless.
    """
    prepared = []
    for layer in params:
        if layer[0] == "hidden":
            _, w, b, gamma, beta = layer
            prepared.append((
                "hidden",
                jnp.asarray(w.T, param_dtype),
                b.reshape(1, -1).astype(jnp.float32),
                gamma.reshape(1, -1).astype(jnp.float32),
                beta.reshape(1, -1).astype(jnp.float32),
            ))
        else:
            _, w, b = layer
            prepared.append((
                "final",
                jnp.asarray(w.T, param_dtype),
                b.reshape(1, -1).astype(jnp.float32),
            ))
    return prepared


def tabular_model_forward(x, prepared, eps=1e-5, max_batch_tile=2048,
                          min_grid_steps=2):
    """Forward pass: one fused pallas_call over a batch-tiled grid."""
    B, D = x.shape
    out_dim = prepared[-1][1].shape[1]

    # Batch tile: multiple of 8 sublanes, capped, and sized so the grid has at
    # least `min_grid_steps` steps when the batch allows it (keeps v7x's
    # second TensorCore busy).  Batch padded only to a whole number of tiles.
    target_tb = _round_up(max(-(-B // min_grid_steps), 1), 8)
    TB = max(8, min(max_batch_tile, target_tb))
    B_pad = _round_up(B, TB)

    x_in = x if B_pad == B else jnp.pad(x, ((0, B_pad - B), (0, 0)))

    flat_args = []
    in_specs = [pl.BlockSpec((TB, D), lambda i: (i, 0))]
    n_hidden = 0
    for layer in prepared:
        if layer[0] == "hidden":
            n_hidden += 1
        for a in layer[1:]:
            flat_args.append(a)
            # Same block every grid step -> parameters stay resident in VMEM.
            in_specs.append(pl.BlockSpec(a.shape, lambda i: (0, 0)))

    kernel = functools.partial(_fused_mlp_kernel, n_hidden=n_hidden, eps=eps)

    y_pad = pl.pallas_call(
        kernel,
        out_shape=jax.ShapeDtypeStruct((B_pad, out_dim), jnp.float32),
        grid=(B_pad // TB,),
        in_specs=in_specs,
        out_specs=pl.BlockSpec((TB, out_dim), lambda i: (i, 0)),
        compiler_params=pltpu.CompilerParams(
            dimension_semantics=("parallel",),     # v7x: split batch over 2 TCs
            vmem_limit_bytes=32 * 1024 * 1024,     # explicit: safe on v5e/v6e/v7x
        ),
    )(x_in, *flat_args)

    # Batch trim only (output already at its true width).
    return y_pad[:B] if B_pad != B else y_pad


def _reference_forward(x, params, eps=1e-5):
    h = x
    for layer in params:
        if layer[0] == "hidden":
            _, w, b, gamma, beta = layer
            h = h @ w.T + b
            mu = jnp.mean(h, axis=-1, keepdims=True)
            var = jnp.mean((h - mu) ** 2, axis=-1, keepdims=True)
            h = (h - mu) / jnp.sqrt(var + eps) * gamma + beta
            h = jnp.maximum(h, 0.0)
        else:
            _, w, b = layer
            h = h @ w.T + b
    return h


if __name__ == "__main__":
    dims = [16, 32, 32, 8]          # TabularModel(dims=[16, 32, 32, 8])
    batch = 8

    key = jax.random.PRNGKey(0)
    key, kx = jax.random.split(key)
    x = jax.random.normal(kx, (batch, dims[0]), jnp.float32)

    params = init_params(key, dims)

    # --- f32 params (exact match to the PyTorch module semantics) -----------
    prepared_f32 = prepare_params(params, param_dtype=jnp.float32)
    y = jax.block_until_ready(tabular_model_forward(x, prepared_f32))
    y_ref = _reference_forward(x, params)
    assert y.shape == (batch, dims[-1])
    assert jnp.allclose(y, y_ref, atol=1e-4, rtol=1e-4)

    # --- multi-step grid + batch-padding path (grid > 1, ragged batch) ------
    key, kx2 = jax.random.split(key)
    x2 = jax.random.normal(kx2, (40, dims[0]), jnp.float32)
    y2 = jax.block_until_ready(
        tabular_model_forward(x2, prepared_f32, max_batch_tile=16))
    assert y2.shape == (40, dims[-1])
    assert jnp.allclose(y2, _reference_forward(x2, params), atol=1e-4, rtol=1e-4)

    # --- bf16 weights / matmul operands (production default on v6e/v7x) -----
    prepared_bf16 = prepare_params(params, param_dtype=jnp.bfloat16)
    y_bf16 = jax.block_until_ready(tabular_model_forward(x, prepared_bf16))
    assert y_bf16.shape == (batch, dims[-1])
    assert jnp.allclose(y_bf16, y_ref, atol=1e-1, rtol=1e-1)

    print("KERNEL_OK")
</pallas_src>

<mosaic_0001>
module attributes {stable_mosaic.version = 11 : i64} {
  func.func @_fused_mlp_kernel(%arg0: i32, %arg1: memref<8x16xf32, #tpu.memory_space<vmem>>, %arg2: memref<16x32xf32, #tpu.memory_space<vmem>>, %arg3: memref<1x32xf32, #tpu.memory_space<vmem>>, %arg4: memref<1x32xf32, #tpu.memory_space<vmem>>, %arg5: memref<1x32xf32, #tpu.memory_space<vmem>>, %arg6: memref<32x32xf32, #tpu.memory_space<vmem>>, %arg7: memref<1x32xf32, #tpu.memory_space<vmem>>, %arg8: memref<1x32xf32, #tpu.memory_space<vmem>>, %arg9: memref<1x32xf32, #tpu.memory_space<vmem>>, %arg10: memref<32x8xf32, #tpu.memory_space<vmem>>, %arg11: memref<1x8xf32, #tpu.memory_space<vmem>>, %arg12: memref<8x8xf32, #tpu.memory_space<vmem>>) attributes {dimension_semantics = [#tpu.dimension_semantics<parallel>], iteration_bounds = array<i64: 1>, scalar_prefetch = 0 : i64, scratch_operands = 0 : i64, tpu.core_type = #tpu.core_type<tc>, window_params = [{transform_indices = @transform_0, window_bounds = array<i64: 8, 16>}, {pipeline_mode = #tpu.pipeline_mode<synchronous>, transform_indices = @transform_1, window_bounds = array<i64: 16, 32>}, {pipeline_mode = #tpu.pipeline_mode<synchronous>, transform_indices = @transform_2, window_bounds = array<i64: 1, 32>}, {pipeline_mode = #tpu.pipeline_mode<synchronous>, transform_indices = @transform_3, window_bounds = array<i64: 1, 32>}, {pipeline_mode = #tpu.pipeline_mode<synchronous>, transform_indices = @transform_4, window_bounds = array<i64: 1, 32>}, {pipeline_mode = #tpu.pipeline_mode<synchronous>, transform_indices = @transform_5, window_bounds = array<i64: 32, 32>}, {pipeline_mode = #tpu.pipeline_mode<synchronous>, transform_indices = @transform_6, window_bounds = array<i64: 1, 32>}, {pipeline_mode = #tpu.pipeline_mode<synchronous>, transform_indices = @transform_7, window_bounds = array<i64: 1, 32>}, {pipeline_mode = #tpu.pipeline_mode<synchronous>, transform_indices = @transform_8, window_bounds = array<i64: 1, 32>}, {pipeline_mode = #tpu.pipeline_mode<synchronous>, transform_indices = @transform_9, window_bounds = array<i64: 32, 8>}, {pipeline_mode = #tpu.pipeline_mode<synchronous>, transform_indices = @transform_10, window_bounds = array<i64: 1, 8>}, {transform_indices = @transform_11, window_bounds = array<i64: 8, 8>}]} {
    %c0 = arith.constant 0 : index
    %c0_0 = arith.constant 0 : index
    %0 = vector.load %arg1[%c0, %c0_0] : memref<8x16xf32, #tpu.memory_space<vmem>>, vector<8x16xf32>
    %c0_1 = arith.constant 0 : index
    %c0_2 = arith.constant 0 : index
    %1 = vector.load %arg2[%c0_1, %c0_2] : memref<16x32xf32, #tpu.memory_space<vmem>>, vector<16x32xf32>
    %c0_3 = arith.constant 0 : index
    %c0_4 = arith.constant 0 : index
    %2 = vector.load %arg3[%c0_3, %c0_4] : memref<1x32xf32, #tpu.memory_space<vmem>>, vector<1x32xf32>
    %c0_5 = arith.constant 0 : index
    %c0_6 = arith.constant 0 : index
    %3 = vector.load %arg4[%c0_5, %c0_6] : memref<1x32xf32, #tpu.memory_space<vmem>>, vector<1x32xf32>
    %c0_7 = arith.constant 0 : index
    %c0_8 = arith.constant 0 : index
    %4 = vector.load %arg5[%c0_7, %c0_8] : memref<1x32xf32, #tpu.memory_space<vmem>>, vector<1x32xf32>
    %cst = arith.constant dense<0.000000e+00> : vector<8x32xf32>
    %5 = tpu.matmul %0, %1, %cst {dimension_numbers = #tpu.dot_dimension_numbers<[1], [0], [0], [1], [0, 0, 1, 1], [], []>} : vector<8x16xf32>, vector<16x32xf32>, vector<8x32xf32> -> vector<8x32xf32>
    %6 = vector.broadcast %2 : vector<1x32xf32> to vector<8x32xf32>
    %7 = arith.addf %5, %6 : vector<8x32xf32>
    %cst_9 = arith.constant dense<0.000000e+00> : vector<8xf32>
    %8 = vector.multi_reduction <add>, %7, %cst_9 [1] : vector<8x32xf32> to vector<8xf32>
    %9 = vector.shape_cast %8 : vector<8xf32> to vector<8x1xf32>
    %cst_10 = arith.constant 3.200000e+01 : f32
    %10 = vector.broadcast %cst_10 : f32 to vector<8x1xf32>
    %11 = arith.divf %9, %10 : vector<8x1xf32>
    %12 = vector.broadcast %11 : vector<8x1xf32> to vector<8x32xf32>
    %13 = arith.subf %7, %12 : vector<8x32xf32>
    %14 = arith.mulf %13, %13 : vector<8x32xf32>
    %cst_11 = arith.constant dense<0.000000e+00> : vector<8xf32>
    %15 = vector.multi_reduction <add>, %14, %cst_11 [1] : vector<8x32xf32> to vector<8xf32>
    %16 = vector.shape_cast %15 : vector<8xf32> to vector<8x1xf32>
    %cst_12 = arith.constant 3.200000e+01 : f32
    %17 = vector.broadcast %cst_12 : f32 to vector<8x1xf32>
    %18 = arith.divf %16, %17 : vector<8x1xf32>
    %cst_13 = arith.constant 9.99999974E-6 : f32
    %19 = vector.broadcast %cst_13 : f32 to vector<8x1xf32>
    %20 = arith.addf %18, %19 : vector<8x1xf32>
    %21 = math.rsqrt %20 : vector<8x1xf32>
    %22 = vector.broadcast %21 : vector<8x1xf32> to vector<8x32xf32>
    %23 = arith.mulf %13, %22 : vector<8x32xf32>
    %24 = vector.broadcast %3 : vector<1x32xf32> to vector<8x32xf32>
    %25 = arith.mulf %23, %24 : vector<8x32xf32>
    %26 = vector.broadcast %4 : vector<1x32xf32> to vector<8x32xf32>
    %27 = arith.addf %25, %26 : vector<8x32xf32>
    %cst_14 = arith.constant 0.000000e+00 : f32
    %28 = vector.broadcast %cst_14 : f32 to vector<8x32xf32>
    %29 = arith.maximumf %27, %28 : vector<8x32xf32>
    %c0_15 = arith.constant 0 : index
    %c0_16 = arith.constant 0 : index
    %30 = vector.load %arg6[%c0_15, %c0_16] : memref<32x32xf32, #tpu.memory_space<vmem>>, vector<32x32xf32>
    %c0_17 = arith.constant 0 : index
    %c0_18 = arith.constant 0 : index
    %31 = vector.load %arg7[%c0_17, %c0_18] : memref<1x32xf32, #tpu.memory_space<vmem>>, vector<1x32xf32>
    %c0_19 = arith.constant 0 : index
    %c0_20 = arith.constant 0 : index
    %32 = vector.load %arg8[%c0_19, %c0_20] : memref<1x32xf32, #tpu.memory_space<vmem>>, vector<1x32xf32>
    %c0_21 = arith.constant 0 : index
    %c0_22 = arith.constant 0 : index
    %33 = vector.load %arg9[%c0_21, %c0_22] : memref<1x32xf32, #tpu.memory_space<vmem>>, vector<1x32xf32>
    %cst_23 = arith.constant dense<0.000000e+00> : vector<8x32xf32>
    %34 = tpu.matmul %29, %30, %cst_23 {dimension_numbers = #tpu.dot_dimension_numbers<[1], [0], [0], [1], [0, 0, 1, 1], [], []>} : vector<8x32xf32>, vector<32x32xf32>, vector<8x32xf32> -> vector<8x32xf32>
    %35 = vector.broadcast %31 : vector<1x32xf32> to vector<8x32xf32>
    %36 = arith.addf %34, %35 : vector<8x32xf32>
    %cst_24 = arith.constant dense<0.000000e+00> : vector<8xf32>
    %37 = vector.multi_reduction <add>, %36, %cst_24 [1] : vector<8x32xf32> to vector<8xf32>
    %38 = vector.shape_cast %37 : vector<8xf32> to vector<8x1xf32>
    %cst_25 = arith.constant 3.200000e+01 : f32
    %39 = vector.broadcast %cst_25 : f32 to vector<8x1xf32>
    %40 = arith.divf %38, %39 : vector<8x1xf32>
    %41 = vector.broadcast %40 : vector<8x1xf32> to vector<8x32xf32>
    %42 = arith.subf %36, %41 : vector<8x32xf32>
    %43 = arith.mulf %42, %42 : vector<8x32xf32>
    %cst_26 = arith.constant dense<0.000000e+00> : vector<8xf32>
    %44 = vector.multi_reduction <add>, %43, %cst_26 [1] : vector<8x32xf32> to vector<8xf32>
    %45 = vector.shape_cast %44 : vector<8xf32> to vector<8x1xf32>
    %cst_27 = arith.constant 3.200000e+01 : f32
    %46 = vector.broadcast %cst_27 : f32 to vector<8x1xf32>
    %47 = arith.divf %45, %46 : vector<8x1xf32>
    %cst_28 = arith.constant 9.99999974E-6 : f32
    %48 = vector.broadcast %cst_28 : f32 to vector<8x1xf32>
    %49 = arith.addf %47, %48 : vector<8x1xf32>
    %50 = math.rsqrt %49 : vector<8x1xf32>
    %51 = vector.broadcast %50 : vector<8x1xf32> to vector<8x32xf32>
    %52 = arith.mulf %42, %51 : vector<8x32xf32>
    %53 = vector.broadcast %32 : vector<1x32xf32> to vector<8x32xf32>
    %54 = arith.mulf %52, %53 : vector<8x32xf32>
    %55 = vector.broadcast %33 : vector<1x32xf32> to vector<8x32xf32>
    %56 = arith.addf %54, %55 : vector<8x32xf32>
    %cst_29 = arith.constant 0.000000e+00 : f32
    %57 = vector.broadcast %cst_29 : f32 to vector<8x32xf32>
    %58 = arith.maximumf %56, %57 : vector<8x32xf32>
    %c0_30 = arith.constant 0 : index
    %c0_31 = arith.constant 0 : index
    %59 = vector.load %arg10[%c0_30, %c0_31] : memref<32x8xf32, #tpu.memory_space<vmem>>, vector<32x8xf32>
    %c0_32 = arith.constant 0 : index
    %c0_33 = arith.constant 0 : index
    %60 = vector.load %arg11[%c0_32, %c0_33] : memref<1x8xf32, #tpu.memory_space<vmem>>, vector<1x8xf32>
    %cst_34 = arith.constant dense<0.000000e+00> : vector<8x8xf32>
    %61 = tpu.matmul %58, %59, %cst_34 {dimension_numbers = #tpu.dot_dimension_numbers<[1], [0], [0], [1], [0, 0, 1, 1], [], []>} : vector<8x32xf32>, vector<32x8xf32>, vector<8x8xf32> -> vector<8x8xf32>
    %62 = vector.broadcast %60 : vector<1x8xf32> to vector<8x8xf32>
    %63 = arith.addf %61, %62 : vector<8x8xf32>
    %c0_35 = arith.constant 0 : index
    %c0_36 = arith.constant 0 : index
    %64 = vector.load %arg12[%c0_35, %c0_36] : memref<8x8xf32, #tpu.memory_space<vmem>>, vector<8x8xf32>
    tpu.vector_store %arg12[%c0_35, %c0_36], %63 {strides = array<i32>} : memref<8x8xf32, #tpu.memory_space<vmem>>, vector<8x8xf32>,
    return
  }
  func.func @transform_0(%arg0: i32) -> (i32, i32) {
    %c0_i32 = arith.constant 0 : i32
    %c0_i32_0 = arith.constant 0 : i32
    return %arg0, %c0_i32 : i32, i32
  }
  func.func @transform_1(%arg0: i32) -> (i32, i32) {
    %c0_i32 = arith.constant 0 : i32
    %c0_i32_0 = arith.constant 0 : i32
    %c0_i32_1 = arith.constant 0 : i32
    return %c0_i32, %c0_i32_0 : i32, i32
  }
  func.func @transform_2(%arg0: i32) -> (i32, i32) {
    %c0_i32 = arith.constant 0 : i32
    %c0_i32_0 = arith.constant 0 : i32
    %c0_i32_1 = arith.constant 0 : i32
    return %c0_i32, %c0_i32_0 : i32, i32
  }
  func.func @transform_3(%arg0: i32) -> (i32, i32) {
    %c0_i32 = arith.constant 0 : i32
    %c0_i32_0 = arith.constant 0 : i32
    %c0_i32_1 = arith.constant 0 : i32
    return %c0_i32, %c0_i32_0 : i32, i32
  }
  func.func @transform_4(%arg0: i32) -> (i32, i32) {
    %c0_i32 = arith.constant 0 : i32
    %c0_i32_0 = arith.constant 0 : i32
    %c0_i32_1 = arith.constant 0 : i32
    return %c0_i32, %c0_i32_0 : i32, i32
  }
  func.func @transform_5(%arg0: i32) -> (i32, i32) {
    %c0_i32 = arith.constant 0 : i32
    %c0_i32_0 = arith.constant 0 : i32
    %c0_i32_1 = arith.constant 0 : i32
    return %c0_i32, %c0_i32_0 : i32, i32
  }
  func.func @transform_6(%arg0: i32) -> (i32, i32) {
    %c0_i32 = arith.constant 0 : i32
    %c0_i32_0 = arith.constant 0 : i32
    %c0_i32_1 = arith.constant 0 : i32
    return %c0_i32, %c0_i32_0 : i32, i32
  }
  func.func @transform_7(%arg0: i32) -> (i32, i32) {
    %c0_i32 = arith.constant 0 : i32
    %c0_i32_0 = arith.constant 0 : i32
    %c0_i32_1 = arith.constant 0 : i32
    return %c0_i32, %c0_i32_0 : i32, i32
  }
  func.func @transform_8(%arg0: i32) -> (i32, i32) {
    %c0_i32 = arith.constant 0 : i32
    %c0_i32_0 = arith.constant 0 : i32
    %c0_i32_1 = arith.constant 0 : i32
    return %c0_i32, %c0_i32_0 : i32, i32
  }
  func.func @transform_9(%arg0: i32) -> (i32, i32) {
    %c0_i32 = arith.constant 0 : i32
    %c0_i32_0 = arith.constant 0 : i32
    %c0_i32_1 = arith.constant 0 : i32
    return %c0_i32, %c0_i32_0 : i32, i32
  }
  func.func @transform_10(%arg0: i32) -> (i32, i32) {
    %c0_i32 = arith.constant 0 : i32
    %c0_i32_0 = arith.constant 0 : i32
    %c0_i32_1 = arith.constant 0 : i32
    return %c0_i32, %c0_i32_0 : i32, i32
  }
  func.func @transform_11(%arg0: i32) -> (i32, i32) {
    %c0_i32 = arith.constant 0 : i32
    %c0_i32_0 = arith.constant 0 : i32
    return %arg0, %c0_i32 : i32, i32
  }
}

</mosaic_0001>

<bundles_post_ra>
// kernel: tpu_custom_call.1
= control target key start
LH: loop header
LB: loop body
LE: loop exit
PB: predicated region body
PF: predicated region fallthrough
CT: control target
= control target key end

     0   :  { %16 = vsyncpa [#allocation3], 0  ;;  %s836_s0 = inlined_call_operand.hbm [shape: f32[8,16], index: 0, kind: input, shape index: {}]   ;;  %s837_s1 = inlined_call_operand.vmem [shape: f32[16,32], index: 1, kind: input, shape index: {}]   ;;  %s838_s2 = inlined_call_operand.hbm [shape: f32[1,32], index: 2, kind: input, shape index: {}]   ;;  %s839_s3 = inlined_call_operand.hbm [shape: f32[1,32], index: 3, kind: input, shape index: {}]   ;;  %s840_s4 = inlined_call_operand.hbm [shape: f32[1,32], index: 4, kind: input, shape index: {}]   ;;  %s841_s5 = inlined_call_operand.vmem [shape: f32[32,32], index: 5, kind: input, shape index: {}]   ;;  %s842_s6 = inlined_call_operand.hbm [shape: f32[1,32], index: 6, kind: input, shape index: {}]   ;;  %s843_s7 = inlined_call_operand.hbm [shape: f32[1,32], index: 7, kind: input, shape index: {}]   ;;  %s844_s8 = inlined_call_operand.hbm [shape: f32[1,32], index: 8, kind: input, shape index: {}]   ;;  %s845_s9 = inlined_call_operand.vmem [shape: f32[32,8], index: 9, kind: input, shape index: {}]   ;;  %s846_s10 = inlined_call_operand.vmem [shape: f32[1,8], index: 10, kind: input, shape index: {}]   ;;  %s847_s11 = inlined_call_operand.hbm [shape: f32[8,8], index: 11, kind: output, shape index: {}]  }
   0x1   :  { %17 = vsyncpa [#allocation6], 0 }
   0x2   :  { %18 = vsyncpa [#allocation9], 0 }
   0x3   :  { %19 = vsyncpa [#allocation12], 0 }
   0x4   :  { %20 = vsyncpa [#allocation4], 0  ;;  %s690_s17 = smov [#allocation5]   ;;  %s691_s19 = smov [#allocation8]  }
   0x5   :  { %s39_s18 = sshll.u32 %s690_s17, 4  ;;  %s59_s20 = sshll.u32 %s691_s19, 4  ;;  %s40_s18 = int_to_ptr.vmem [resolvable:$true] %s39_s18  ;;  %s60_s20 = int_to_ptr.vmem [resolvable:$true] %s59_s20 }
   0x6   :  { %s528_s21 = scalar_lea.vmem %s40_s18, 16  ;;  %s532_s22 = scalar_lea.vmem %s40_s18, 32 }
   0x7   :  { %p529_p0 = scmp.ne.s32.totalorder %s40_s18, %s528_s21  ;;  %p533_p1 = scmp.lt.s32.totalorder %s40_s18, %s40_s18 }
   0x8   :  { %p534_p2 = scmp.lt.s32.totalorder %s532_s22, %s528_s21 }
   0xa   :  { %p535_p3 = por %p534_p2, %p533_p1 }
   0xc   :  { %p536_p4 = pnand %p535_p3, %p529_p0 }
   0xe   :  { %539 = shalt.err (!%p536_p4)
}
   0xf   :  { %42 = dma.hbm_to_vmem [thread:$0]  %s838_s2, 16, %s40_s18, [#allocation6]  }
  0x10   :  { %s548_s25 = scalar_lea.vmem %s60_s20, 16  ;;  %s552_s26 = scalar_lea.vmem %s60_s20, 32 }
  0x11   :  { %p549_p5 = scmp.ne.s32.totalorder %s60_s20, %s548_s25  ;;  %p553_p6 = scmp.lt.s32.totalorder %s60_s20, %s60_s20 }
  0x12   :  { %p554_p7 = scmp.lt.s32.totalorder %s552_s26, %s548_s25 }
  0x14   :  { %p555_p8 = por %p554_p7, %p553_p6 }
  0x16   :  { %p556_p9 = pnand %p555_p8, %p549_p5 }
  0x18   :  { %559 = shalt.err (!%p556_p9)
}
  0x19   :  { %62 = dma.hbm_to_vmem [thread:$0]  %s840_s4, 16, %s60_s20, [#allocation9]  }
  0x1a   :  { %s692_s29 = smov [#allocation11]   ;;  %s693_s12 = smov [#allocation2]  }
  0x1b   :  { %s81_s30 = sshll.u32 %s692_s29, 4  ;;  %s27_s13 = sshll.u32 %s693_s12, 4  ;;  %s82_s30 = int_to_ptr.vmem [resolvable:$true] %s81_s30  ;;  %s28_s13 = int_to_ptr.vmem [resolvable:$true] %s27_s13 }
  0x1c   :  { %s568_s14 = scalar_lea.vmem %s82_s30, 16  ;;  %s572_s2 = scalar_lea.vmem %s82_s30, 32 }
  0x1d   :  { %p569_p10 = scmp.ne.s32.totalorder %s82_s30, %s568_s14  ;;  %p573_p11 = scmp.lt.s32.totalorder %s82_s30, %s82_s30 }
  0x1e   :  { %p574_p12 = scmp.lt.s32.totalorder %s572_s2, %s568_s14 }
  0x20   :  { %p575_p13 = por %p574_p12, %p573_p11 }
  0x22   :  { %p576_p0 = pnand %p575_p13, %p569_p10 }
  0x24   :  { %579 = shalt.err (!%p576_p0)
}
  0x25   :  { %84 = dma.hbm_to_vmem [thread:$0]  %s843_s7, 16, %s82_s30, [#allocation12]  }
  0x26   :  { %s588_s17 = scalar_lea.vmem %s28_s13, 128  ;;  %p593_p2 = scmp.lt.s32.totalorder %s28_s13, %s28_s13 }
  0x27   :  { %p589_p1 = scmp.ne.s32.totalorder %s28_s13, %s588_s17  ;;  %p594_p3 = scmp.lt.s32.totalorder %s588_s17, %s588_s17 }
  0x29   :  { %p595_p4 = por %p594_p3, %p593_p2 }
  0x2b   :  { %p596_p5 = pnand %p595_p4, %p589_p1 }
  0x2d   :  { %599 = shalt.err (!%p596_p5)
}
  0x2e   :  { %30 = dma.hbm_to_vmem [thread:$0]  %s836_s0, 128, %s28_s13, [#allocation3]  }
  0x2f   :  { %s694_s19 = smov [#allocation7]   ;;  %s695_s21 = smov [#allocation10]  }
  0x30   :  { %s49_s20 = sshll.u32 %s694_s19, 4  ;;  %s71_s22 = sshll.u32 %s695_s21, 4  ;;  %s50_s20 = int_to_ptr.vmem [resolvable:$true] %s49_s20  ;;  %s72_s22 = int_to_ptr.vmem [resolvable:$true] %s71_s22 }
  0x31   :  { %s608_s23 = scalar_lea.vmem %s50_s20, 16  ;;  %s612_s7 = scalar_lea.vmem %s50_s20, 32 }
  0x32   :  { %p609_p6 = scmp.ne.s32.totalorder %s50_s20, %s608_s23  ;;  %p613_p7 = scmp.lt.s32.totalorder %s50_s20, %s50_s20 }
  0x33   :  { %p614_p8 = scmp.lt.s32.totalorder %s612_s7, %s608_s23 }
  0x35   :  { %p615_p9 = por %p614_p8, %p613_p7 }
  0x37   :  { %p616_p10 = pnand %p615_p9, %p609_p6 }
  0x39   :  { %619 = shalt.err (!%p616_p10)
}
  0x3a   :  { %52 = dma.hbm_to_vmem [thread:$0]  %s839_s3, 16, %s50_s20, [#allocation6]  }
  0x3b   :  { %s628_s26 = scalar_lea.vmem %s72_s22, 16  ;;  %s632_s0 = scalar_lea.vmem %s72_s22, 32 }
  0x3c   :  { %p629_p11 = scmp.ne.s32.totalorder %s72_s22, %s628_s26  ;;  %p633_p12 = scmp.lt.s32.totalorder %s72_s22, %s72_s22 }
  0x3d   :  { %p634_p13 = scmp.lt.s32.totalorder %s632_s0, %s628_s26 }
  0x3f   :  { %p635_p0 = por %p634_p13, %p633_p12 }
  0x41   :  { %p636_p1 = pnand %p635_p0, %p629_p11 }
  0x43   :  { %639 = shalt.err (!%p636_p1)
}
  0x44   :  { %74 = dma.hbm_to_vmem [thread:$0]  %s842_s6, 16, %s72_s22, [#allocation9]  }
  0x45   :  { %s696_s29 = smov [#allocation13]  }
  0x46   :  { %s91_s30 = sshll.u32 %s696_s29, 4  ;;  %s92_s30 = int_to_ptr.vmem [resolvable:$true] %s91_s30 }
  0x47   :  { %s648_s12 = scalar_lea.vmem %s92_s30, 16  ;;  %s652_s13 = scalar_lea.vmem %s92_s30, 32 }
  0x48   :  { %p649_p2 = scmp.ne.s32.totalorder %s92_s30, %s648_s12  ;;  %p653_p3 = scmp.lt.s32.totalorder %s92_s30, %s92_s30 }
  0x49   :  { %p654_p4 = scmp.lt.s32.totalorder %s652_s13, %s648_s12 }
  0x4b   :  { %p655_p5 = por %p654_p4, %p653_p3 }
  0x4d   :  { %p656_p6 = pnand %p655_p5, %p649_p2 }
  0x4f   :  { %659 = shalt.err (!%p656_p6)
}
  0x50   :  { %94 = dma.hbm_to_vmem [thread:$0]  %s844_s8, 16, %s92_s30, [#allocation12]  }
  0x51   :  { %680 = dma.done.wait [#allocation3], 128  }
  0x52   :  { %681 = vsyncadd [#allocation3], 4294967168 }
  0x53   :  { %682 = dma.done.wait [#allocation6], 32  }
  0x54   :  { %683 = vsyncadd [#allocation6], 4294967264 }
  0x55   :  { %684 = dma.done.wait [#allocation9], 32  }
  0x56   :  { %685 = vsyncadd [#allocation9], 4294967264 }
  0x57   :  { %686 = dma.done.wait [#allocation12], 32  }
  0x58   :  { %687 = vsyncadd [#allocation12], 4294967264  ;;  %v697_v0 = vmov 0.0   ;;  %vm698_vm0 = vmmov 0   ;;  %v122_v1 = vld [vmem:[%s837_s1 + $0x8] sm:$0xff]  ;;  %v121_v2 = vld [vmem:[%s837_s1] sm:$0xff] }
  0x59   :  { %477 = vmatprep.subr.mxu0 %v697_v0  ;;  %481 = vmatprep.mubr.msk.f32.mxu0 %vm698_vm0, %v697_v0  ;;  %v120_v3 = vld [vmem:[#allocation2] sm:$0xff]  ;;  %vm132_vm1 = vcmask 130048   ;;  %v454_v4 = vld [vmem:[#allocation5] ss:$0 sm:$0xff]  ;;  %vm206_vm2 = vcmask 261120   ;;  %v239_v14 = vld [vmem:[%s841_s5 + $0x18] sm:$0xff] }
  0x5a   :  { %484 = vmatprep.subr.mxu1 %v697_v0  ;;  %492 = vmatprep.mubr.msk.f32.mxu1 %vm698_vm0, %v697_v0  ;;  %v238_v15 = vld [vmem:[%s841_s5 + $0x10] sm:$0xff]  ;;  %v237_v16 = vld [vmem:[%s841_s5 + $0x8] sm:$0xff]  ;;  %v236_v17 = vld [vmem:[%s841_s5] sm:$0xff]  ;;  %vm434_vm3 = vcmask 64512  }
  0x5b   :  { %478 = vmatpush3.msra.mxu0 %v122_v1  ;;  %485 = vmatpush3.msra.mxu1 %v239_v14  ;;  %v456_v22 = vld [vmem:[#allocation7] ss:$0 sm:$0xff]  ;;  %v457_v24 = vld [vmem:[#allocation8] ss:$0 sm:$0xff]  ;;  %v458_v28 = vld [vmem:[#allocation10] ss:$0 sm:$0xff] }
  0x5c   :  { %479 = vmatprep.subr.mxu0 %v697_v0  ;;  %486 = vmatprep.subr.mxu1 %v697_v0  ;;  %v353_v38 = vld [vmem:[%s845_s9 + $0x18] sm:$0xff]  ;;  %v352_v39 = vld [vmem:[%s845_s9 + $0x10] sm:$0xff]  ;;  %v351_v40 = vld [vmem:[%s845_s9 + $0x8] sm:$0xff] }
  0x5d   :  { %480 = vmatpush3.msra.mxu0 %v121_v2  ;;  %487 = vmatpush3.msra.mxu1 %v238_v15  ;;  %v350_v41 = vld [vmem:[%s845_s9] sm:$0xff]  ;;  %v460_v46 = vld [vmem:[#allocation11] ss:$0 sm:$0xff]  ;;  %v461_v48 = vld [vmem:[#allocation13] ss:$0 sm:$0xff]  ;;  %s699_s9 = smov [#allocation14]  }
  0x5e   :  { %482 = vmatmul.mubr.msk.f32.vlgmr.msra.gmra.mxu0 %vm132_vm1, %v120_v3  ;;  %495 = vmatprep.subr.mxu0 %v697_v0  ;;  %v462_v52 = vld [vmem:[%s846_s10] ss:$0 sm:$0xff]  ;;  %s442_s29 = sshll.u32 %s699_s9, 4  ;;  %s443_s29 = int_to_ptr.vmem [resolvable:$true] %s442_s29 }
  0x5f   :  { %503 = vmatprep.mubr.msk.f32.mxu0 %vm698_vm0, %v697_v0  ;;  %488 = vmatprep.subr.mxu1 %v697_v0  ;;  %s660_s30 = scalar_lea.vmem %s443_s29, 128  ;;  %p665_p8 = scmp.lt.s32.totalorder %s443_s29, %s443_s29 }
  0x60   :  { %489 = vmatpush3.msra.mxu1 %v237_v16  ;;  %496 = vmatpush3.msra.mxu0 %v353_v38  ;;  %p661_p7 = scmp.ne.s32.totalorder %s443_s29, %s660_s30  ;;  %p666_p9 = scmp.lt.s32.totalorder %s660_s30, %s660_s30 }
  0x61   :  { %490 = vmatprep.subr.mxu1 %v697_v0  ;;  %497 = vmatprep.subr.mxu0 %v697_v0 }
  0x62   :  { %491 = vmatpush3.msra.mxu1 %v236_v17  ;;  %498 = vmatpush3.msra.mxu0 %v352_v39  ;;  %p667_p10 = por %p666_p9, %p665_p8 }
  0x63   :  { %499 = vmatprep.subr.mxu0 %v697_v0 }
  0x64   :  { %500 = vmatpush3.msra.mxu0 %v351_v40  ;;  %p668_p11 = pnand %p667_p10, %p661_p7 }
  0x65   :  { %501 = vmatprep.subr.mxu0 %v697_v0 }
  0x66   :  { %502 = vmatpush3.msra.mxu0 %v350_v41 }
 0x11e   :  { %v202_v5 = vpop.f32.mrf.mxu0 }
 0x11f   :  { %v203_v6 = vadd.f32 %v454_v4, %v202_v5 }
 0x120   :  { %v483_v7 = vpop.f32.mrf.mxu0 }
 0x121   :  { %v207_v8 = vsel %vm206_vm2, %v203_v6, 0.0 }
 0x122   :  { %208 = vadd.xlane.f32.xlu0 %v207_v8 }
 0x1ab   :  { %v209_v9 = vpop.xlane.xlu0 %208 }
 0x1ac   :  { %v211_v10 = vmul.f32 0.03125, %v209_v9 }
 0x1ae   :  { %v212_v11 = vsub.f32 %v203_v6, %v211_v10 }
 0x1b0   :  { %v213_v12 = vmul.f32 %v212_v11, %v212_v11 }
 0x1b2   :  { %v214_v13 = vsel %vm206_vm2, %v213_v12, 0.0 }
 0x1b3   :  { %215 = vadd.xlane.f32.xlu0 %v214_v13 }
 0x23c   :  { %v216_v18 = vpop.xlane.xlu0 %215 }
 0x23d   :  { %v217_v19 = vmul.f32 0.03125, %v216_v18 }
 0x23f   :  { %v218_v20 = vadd.f32 1e-05, %v217_v19 }
 0x241   :  { %516 = vrsqrt.f32 %v218_v20 }
 0x24e   :  { %v517_v21 = vpop.eup %516 }
 0x24f   :  { %v220_v23 = vmul.f32 %v517_v21, %v212_v11 }
 0x251   :  { %v227_v25 = vmul.f32 %v456_v22, %v220_v23 }
 0x253   :  { %v234_v26 = vadd.f32 %v457_v24, %v227_v25 }
 0x255   :  { %v235_v27 = vmax.f32 %v234_v26, 0.0 }
 0x257   :  { %493 = vmatmul.mubr.msk.f32.vlgmr.msra.gmra.mxu1 %vm206_vm2, %v235_v27 }
 0x317   :  { %v318_v29 = vpop.f32.mrf.mxu1 }
 0x318   :  { %v319_v30 = vadd.f32 %v458_v28, %v318_v29 }
 0x319   :  { %v494_v31 = vpop.f32.mrf.mxu1 }
 0x31a   :  { %v322_v32 = vsel %vm206_vm2, %v319_v30, 0.0 }
 0x31b   :  { %323 = vadd.xlane.f32.xlu1 %v322_v32 }
 0x3a4   :  { %v324_v33 = vpop.xlane.xlu1 %323 }
 0x3a5   :  { %v325_v34 = vmul.f32 0.03125, %v324_v33 }
 0x3a7   :  { %v326_v35 = vsub.f32 %v319_v30, %v325_v34 }
 0x3a9   :  { %v327_v36 = vmul.f32 %v326_v35, %v326_v35 }
 0x3ab   :  { %v328_v37 = vsel %vm206_vm2, %v327_v36, 0.0 }
 0x3ac   :  { %329 = vadd.xlane.f32.xlu1 %v328_v37 }
 0x435   :  { %v330_v42 = vpop.xlane.xlu1 %329 }
 0x436   :  { %v331_v43 = vmul.f32 0.03125, %v330_v42 }
 0x438   :  { %v332_v44 = vadd.f32 1e-05, %v331_v43 }
 0x43a   :  { %518 = vrsqrt.f32 %v332_v44 }
 0x447   :  { %v519_v45 = vpop.eup %518 }
 0x448   :  { %v334_v47 = vmul.f32 %v519_v45, %v326_v35 }
 0x44a   :  { %v341_v49 = vmul.f32 %v460_v46, %v334_v47 }
 0x44c   :  { %v348_v50 = vadd.f32 %v461_v48, %v341_v49 }
 0x44e   :  { %v349_v51 = vmax.f32 %v348_v50, 0.0 }
 0x450   :  { %504 = vmatmul.mubr.msk.f32.vlgmr.msra.gmra.mxu0 %vm206_vm2, %v349_v51 }
 0x510   :  { %v430_v53 = vpop.f32.mrf.mxu0 }
 0x511   :  { %v431_v54 = vadd.f32 %v462_v52, %v430_v53 }
 0x512   :  { %v505_v55 = vpop.f32.mrf.mxu0 }
 0x513   :  { %435 = vst.msk [vmem:[#allocation14] sm:$0xff] %vm434_vm3, %v431_v54 }
 0x514   :  { %671 = shalt.err (!%p668_p11)
}
 0x515   :  { %445 = dma.vmem_to_hbm [thread:$0]  %s443_s29, 128, %s847_s11, [#allocation4]  }
 0x516   :  { %688 = dma.done.wait [#allocation4], 128  }
 0x517   :  { %689 = vsyncadd [#allocation4], 4294967168 }
 0x518   :  { %449 = vsyncpa [#allocation3], 1 }
 0x519   :  { %450 = vsyncpa [#allocation6], 1 }
 0x51a   :  { %451 = vsyncpa [#allocation9], 1 }
 0x51b   :  { %452 = vsyncpa [#allocation12], 1 }
 0x51c   :  { %453 = vsyncpa [#allocation4], 1 }

</bundles_post_ra>
